<compile_context>
chip_gen: v6e
topology: v6e:2x2x1
jax: 0.10.0
libtpu: 0.0.40
codegen_flags: <defaults>
</compile_context>

<pallas_src>
import math

import jax
import jax.numpy as jnp
import numpy as np
from jax import lax
from jax.experimental import pallas as pl
from jax.experimental.pallas import tpu as pltpu

_LANE = 128   # lane width of a vreg / MXU tile
_SUB = 8      # f32 sublane count
_PRO = 16     # strip rows built register-resident before block doubling


def _k_strip_kernel(abar_ref, bbar_ref, c_ref, strip_ref, v_ref, build_ref):
    """Builds the (128, Lp) Toeplitz strip S[a, x] = K[x - a] for x >= a, else 0.

    abar_ref: (N, N) f32   bbar_ref: (N, 1) f32   c_ref: (1, N) f32
    strip_ref: (128, Lp) output (f32 or bf16)
    v_ref:     (N, Lp) f32 scratch, Krylov matrix V[:, t] = Abar^t @ Bbar
    build_ref: (128, Lp) f32 scratch (strip is built in f32 and cast once at the end)
    """
    N, Lp = v_ref.shape

    # ---- Phase 1: Krylov matrix by doubling; first 128 columns stay in registers. ---
    first = min(_LANE, Lp)
    col = lax.broadcasted_iota(jnp.int32, (N, first), 1)
    v128 = jnp.where(col == 0,
                     jnp.broadcast_to(bbar_ref[...], (N, first)),
                     jnp.zeros((N, first), jnp.float32))          # col 0 = Bbar
    p = abar_ref[...]                                             # invariant: p = Abar^w
    w = 1
    while w < first:                                              # static ~log2(128) steps
        prod = jnp.dot(p, v128, preferred_element_type=jnp.float32)
        shifted = pltpu.roll(prod, shift=w, axis=1)               # col j+w = Abar^w V[:, j]
        v128 = jnp.where((col >= w) & (col < 2 * w), shifted, v128)
        if 2 * w < Lp:
            p = jnp.dot(p, p, preferred_element_type=jnp.float32)
        w *= 2
    v_ref[:, pl.ds(0, first)] = v128                              # one aligned (N,128) store

    m = first
    while m < Lp:                                                 # 128-lane-multiple chunks
        step = min(m, Lp - m)
        v_ref[:, pl.ds(m, step)] = jnp.dot(p, v_ref[:, pl.ds(0, step)],
                                           preferred_element_type=jnp.float32)
        if 2 * m < Lp:
            p = jnp.dot(p, p, preferred_element_type=jnp.float32)
        m += step

    # K[t] = C @ Abar^t @ Bbar : one (1, N) x (N, Lp) MXU matmul.
    k_row = jnp.dot(c_ref[...], v_ref[...], preferred_element_type=jnp.float32)

    # ---- Phase 2a: strip rows 0.._PRO-1 fully register-resident. --------------------
    # Row a = K circularly rolled right by a (binary decomposition of the shift), then
    # lanes < a are zeroed; a single aligned (_PRO, Lp) store.
    blk = jnp.broadcast_to(k_row, (_PRO, Lp))
    row = lax.broadcasted_iota(jnp.int32, (_PRO, Lp), 0)
    w = 1
    while w < _PRO:
        rolled = pltpu.roll(blk, shift=w, axis=1)
        blk = jnp.where((row & w) != 0, rolled, blk)
        w *= 2
    lane = lax.broadcasted_iota(jnp.int32, (_PRO, Lp), 1)
    blk = jnp.where(lane >= row, blk, jnp.zeros_like(blk))
    build_ref[pl.ds(0, _PRO), :] = blk

    # ---- Phase 2b: rows _PRO..127 by aligned block doubling + iota mask. ------------
    rows = build_ref.shape[0]
    m = _PRO
    while m < rows:
        step = min(m, rows - m)
        rolled = pltpu.roll(build_ref[pl.ds(0, step), :], shift=m, axis=1)
        lane_b = lax.broadcasted_iota(jnp.int32, (step, Lp), 1)
        build_ref[pl.ds(m, step), :] = jnp.where(lane_b >= m, rolled,
                                                 jnp.zeros_like(rolled))
        m += step

    strip_ref[...] = build_ref[...].astype(strip_ref.dtype)


def _conv_kernel(d_ref, u_ref, strip_ref, out_ref):
    """One 128-lane output column tile of y = causal_conv(u, K) + D * u.

    d_ref: (1,) f32 SMEM   u_ref: (H, Lp) f32 (VMEM-resident across the grid)
    strip_ref: (128, Lp) f32/bf16 (VMEM-resident)   out_ref: (H, 128) tile c of y.
    """
    c = pl.program_id(0)
    H = u_ref.shape[0]

    def body(r, acc):
        u_blk = u_ref[:, pl.ds(pl.multiple_of(r * _LANE, _LANE), _LANE)]
        s_blk = strip_ref[:, pl.ds(pl.multiple_of((c - r) * _LANE, _LANE), _LANE)]
        return acc + jnp.dot(u_blk.astype(strip_ref.dtype), s_blk,
                             preferred_element_type=jnp.float32)

    acc = lax.fori_loop(0, c + 1, body, jnp.zeros((H, _LANE), jnp.float32))
    u_c = u_ref[:, pl.ds(pl.multiple_of(c * _LANE, _LANE), _LANE)]
    out_ref[...] = (acc + d_ref[0] * u_c).astype(out_ref.dtype)


def ssm_layer_forward(u, Abar, Bbar, C, D, *, conv_dtype=jnp.float32):
    """Forward pass of SSMLayer in convolution mode.

    u: (L,) or (H, L) float32 — one or a batch of trajectories through the SAME SSM.
    Returns (1, L) for 1-D input (matching the PyTorch module's broadcasting), else (H, L).
    conv_dtype: dtype of the Toeplitz-strip / conv matmul operands (bf16 recommended on
                v6e/v7x; accumulation stays f32 either way).
    """
    u = jnp.asarray(u, jnp.float32)
    single = u.ndim == 1
    if single:
        u = u[None, :]
    H, L = u.shape
    N = int(Abar.shape[0])

    Lp = max(_LANE, ((L + _LANE - 1) // _LANE) * _LANE)    # lane-dense time axis
    Hp = max(_SUB, ((H + _SUB - 1) // _SUB) * _SUB)        # sublane-dense batch axis
    Np = max(_SUB, ((N + _SUB - 1) // _SUB) * _SUB)        # padded latent dim (zero pad)

    abar = jnp.zeros((Np, Np), jnp.float32).at[:N, :N].set(
        jnp.asarray(Abar, jnp.float32).reshape(N, N))
    bbar = jnp.zeros((Np, 1), jnp.float32).at[:N, :].set(
        jnp.asarray(Bbar, jnp.float32).reshape(N, 1))
    c_row = jnp.zeros((1, Np), jnp.float32).at[:, :N].set(
        jnp.asarray(C, jnp.float32).reshape(1, N))
    d = jnp.asarray(D, jnp.float32).reshape(1)             # 1-D SMEM scalar
    u_pad = jnp.zeros((Hp, Lp), jnp.float32).at[:H, :L].set(u)

    itemsize = int(np.dtype(conv_dtype).itemsize)

    # ---- Call 1: K + Toeplitz strip (single block, O(N*L + 128*L) VMEM). ------------
    vmem1 = 2 * (Np * Lp * 4 + _LANE * Lp * 4 + _LANE * Lp * itemsize) + (4 << 20)
    strip = pl.pallas_call(
        _k_strip_kernel,
        out_shape=jax.ShapeDtypeStruct((_LANE, Lp), conv_dtype),
        in_specs=[pl.BlockSpec(memory_space=pltpu.MemorySpace.VMEM)] * 3,
        out_specs=pl.BlockSpec(memory_space=pltpu.MemorySpace.VMEM),
        scratch_shapes=[pltpu.VMEM((Np, Lp), jnp.float32),       # Krylov matrix V
                        pltpu.VMEM((_LANE, Lp), jnp.float32)],   # f32 strip build buffer
        compiler_params=pltpu.CompilerParams(
            vmem_limit_bytes=int(min(max(vmem1, 32 << 20), 64 << 20))),
        cost_estimate=pl.CostEstimate(
            flops=2 * Np * Np * Lp + 2 * Np * Lp,
            transcendentals=0,
            bytes_accessed=int((Np * Np + 2 * Np) * 4 + _LANE * Lp * itemsize)),
    )(abar, bbar, c_row)

    # ---- Call 2: causal conv + skip; parallel grid over 128-lane output tiles. ------
    ntiles = Lp // _LANE
    vmem2 = 2 * (Hp * Lp * 4 + _LANE * Lp * itemsize + 2 * Hp * _LANE * 4) + (4 << 20)
    y = pl.pallas_call(
        _conv_kernel,
        out_shape=jax.ShapeDtypeStruct((Hp, Lp), jnp.float32),
        grid=(ntiles,),
        in_specs=[
            pl.BlockSpec(memory_space=pltpu.MemorySpace.SMEM),    # D (1,) scalar
            pl.BlockSpec((Hp, Lp), lambda c: (0, 0)),             # u, VMEM-resident
            pl.BlockSpec((_LANE, Lp), lambda c: (0, 0)),          # strip, VMEM-resident
        ],
        out_specs=pl.BlockSpec((Hp, _LANE), lambda c: (0, c)),
        compiler_params=pltpu.CompilerParams(
            dimension_semantics=("parallel",),
            vmem_limit_bytes=int(min(max(vmem2, 32 << 20), 64 << 20))),
        cost_estimate=pl.CostEstimate(
            flops=2 * Hp * _LANE * _LANE * (ntiles * (ntiles + 1) // 2) + 2 * Hp * Lp,
            transcendentals=0,
            bytes_accessed=int(Hp * Lp * 8 + _LANE * Lp * itemsize + 4)),
    )(d, u_pad, strip)

    return y[:H, :L]


# ---------------- parameter setup & pure-JAX reference (deterministic glue) ----------

def init_ssm_layer(key, latent_dim, dt_min=1e-3, dt_max=1e-1):
    """Mirrors SSMLayer.__init__ (random A,B,C,D; log-uniform dt; bilinear discretize).
    A is shifted by -N*I so Abar is stable: the raw torch.rand init has spectral radius
    > 1 and Abar^t overflows for long L (a numerical property of the original module,
    not of the kernel)."""
    N = latent_dim
    ka, kb, kc, kd, kt = jax.random.split(key, 5)
    A = (jax.random.uniform(ka, (N, N), jnp.float32)
         - float(N) * jnp.eye(N, dtype=jnp.float32))
    B = jax.random.uniform(kb, (N, 1), jnp.float32)
    C = jax.random.uniform(kc, (1, N), jnp.float32)
    D = jax.random.uniform(kd, (1, 1), jnp.float32)
    log_dt = (jax.random.uniform(kt, (), jnp.float32)
              * (math.log(dt_max) - math.log(dt_min)) + math.log(dt_min))
    dt = jnp.exp(log_dt)
    I = jnp.eye(N, dtype=jnp.float32)
    Bl = jnp.linalg.inv(I - dt / 2.0 * A)
    Abar = Bl @ (I + dt / 2.0 * A)
    Bbar = Bl @ (dt * B)
    return Abar, Bbar, C, D


def ssm_reference(u, Abar, Bbar, C, D):
    """Pure-JAX reference matching the PyTorch forward (convolution mode), applied
    row-wise to a (H, L) batch (or a single (L,) trajectory)."""
    u = jnp.atleast_2d(jnp.asarray(u, jnp.float32))
    _, L = u.shape

    def kstep(v, _):
        k = (C @ v)[0, 0]
        return Abar @ v, k

    _, K = lax.scan(kstep, Bbar, None, length=L)                 # (L,)
    ii = jnp.arange(L)[:, None]
    jj = jnp.arange(L)[None, :]
    diff = ii - jj
    T = jnp.where(diff >= 0, K[jnp.clip(diff, 0, L - 1)], 0.0)   # T[i, j] = K[i - j]
    y_conv = u @ T.T                                             # (H, L)
    d0 = jnp.asarray(D, jnp.float32).reshape(())
    return y_conv + d0 * u


if __name__ == "__main__":
    key = jax.random.PRNGKey(0)
    k_param, k_u = jax.random.split(key)

    latent_dim = 8   # N
    L = 256          # sequence length
    H = 8            # batch of sequences through the same layer (MXU M dimension)

    Abar, Bbar, C, D = init_ssm_layer(k_param, latent_dim)
    u_batch = jax.random.uniform(k_u, (H, L), jnp.float32)

    y_ref = jax.block_until_ready(ssm_reference(u_batch, Abar, Bbar, C, D))

    # f32 conv operands: matches the f32 reference tightly.
    y32 = jax.block_until_ready(
        ssm_layer_forward(u_batch, Abar, Bbar, C, D, conv_dtype=jnp.float32))
    np.testing.assert_allclose(np.asarray(y32), np.asarray(y_ref), rtol=2e-3, atol=2e-4)

    # bf16 conv operands (recommended on v6e/v7x), f32 accumulation.
    ybf = jax.block_until_ready(
        ssm_layer_forward(u_batch, Abar, Bbar, C, D, conv_dtype=jnp.bfloat16))
    np.testing.assert_allclose(np.asarray(ybf), np.asarray(y_ref), rtol=2e-2, atol=2e-3)

    # Single-trajectory call keeps the PyTorch module's (1, L) output shape/semantics.
    y1 = jax.block_until_ready(ssm_layer_forward(u_batch[0], Abar, Bbar, C, D))
    assert y1.shape == (1, L) and y1.dtype == jnp.float32
    np.testing.assert_allclose(np.asarray(y1), np.asarray(y_ref[:1]),
                               rtol=2e-3, atol=2e-4)

    print("KERNEL_OK")
</pallas_src>

<mosaic_0001>
module attributes {stable_mosaic.version = 11 : i64} {
  func.func @_k_strip_kernel(%arg0: memref<8x8xf32, #tpu.memory_space<vmem>>, %arg1: memref<8x1xf32, #tpu.memory_space<vmem>>, %arg2: memref<1x8xf32, #tpu.memory_space<vmem>>, %arg3: memref<128x256xf32, #tpu.memory_space<vmem>>, %arg4: memref<8x256xf32, #tpu.memory_space<vmem>>, %arg5: memref<128x256xf32, #tpu.memory_space<vmem>>) attributes {dimension_semantics = [], scalar_prefetch = 0 : i64, scratch_operands = 2 : i64, tpu.core_type = #tpu.core_type<tc>} {
    %0 = tpu.iota {dimensions = array<i32: 1>} : vector<8x128xi32>
    %c0_i32 = arith.constant 0 : i32
    %1 = vector.broadcast %c0_i32 : i32 to vector<8x128xi32>
    %2 = arith.cmpi eq, %0, %1 : vector<8x128xi32>
    %c0 = arith.constant 0 : index
    %c0_0 = arith.constant 0 : index
    %3 = vector.load %arg1[%c0, %c0_0] : memref<8x1xf32, #tpu.memory_space<vmem>>, vector<8x1xf32>
    %4 = vector.shape_cast %3 : vector<8x1xf32> to vector<8x1xf32>
    %5 = vector.broadcast %4 : vector<8x1xf32> to vector<8x128xf32>
    %cst = arith.constant 0.000000e+00 : f32
    %6 = vector.broadcast %cst : f32 to vector<8x128xf32>
    %7 = arith.select %2, %5, %6 : vector<8x128xi1>, vector<8x128xf32>
    %c0_1 = arith.constant 0 : index
    %c0_2 = arith.constant 0 : index
    %8 = vector.load %arg0[%c0_1, %c0_2] : memref<8x8xf32, #tpu.memory_space<vmem>>, vector<8x8xf32>
    %cst_3 = arith.constant dense<0.000000e+00> : vector<8x128xf32>
    %9 = tpu.matmul %8, %7, %cst_3 {dimension_numbers = #tpu.dot_dimension_numbers<[1], [0], [0], [1], [0, 0, 1, 1], [], []>} : vector<8x8xf32>, vector<8x128xf32>, vector<8x128xf32> -> vector<8x128xf32>
    %c1_i32 = arith.constant 1 : i32
    %10 = tpu.dynamic_rotate %9 by %c1_i32 dim 1 : vector<8x128xf32>, i32 -> vector<8x128xf32>
    %c1_i32_4 = arith.constant 1 : i32
    %11 = vector.broadcast %c1_i32_4 : i32 to vector<8x128xi32>
    %12 = arith.cmpi sge, %0, %11 : vector<8x128xi32>
    %c2_i32 = arith.constant 2 : i32
    %13 = vector.broadcast %c2_i32 : i32 to vector<8x128xi32>
    %14 = arith.cmpi slt, %0, %13 : vector<8x128xi32>
    %15 = arith.andi %12, %14 : vector<8x128xi1>
    %16 = arith.select %15, %10, %7 : vector<8x128xi1>, vector<8x128xf32>
    %cst_5 = arith.constant dense<0.000000e+00> : vector<8x8xf32>
    %17 = tpu.matmul %8, %8, %cst_5 {dimension_numbers = #tpu.dot_dimension_numbers<[1], [0], [0], [1], [0, 0, 1, 1], [], []>} : vector<8x8xf32>, vector<8x8xf32>, vector<8x8xf32> -> vector<8x8xf32>
    %cst_6 = arith.constant dense<0.000000e+00> : vector<8x128xf32>
    %18 = tpu.matmul %17, %16, %cst_6 {dimension_numbers = #tpu.dot_dimension_numbers<[1], [0], [0], [1], [0, 0, 1, 1], [], []>} : vector<8x8xf32>, vector<8x128xf32>, vector<8x128xf32> -> vector<8x128xf32>
    %c2_i32_7 = arith.constant 2 : i32
    %19 = tpu.dynamic_rotate %18 by %c2_i32_7 dim 1 : vector<8x128xf32>, i32 -> vector<8x128xf32>
    %c2_i32_8 = arith.constant 2 : i32
    %20 = vector.broadcast %c2_i32_8 : i32 to vector<8x128xi32>
    %21 = arith.cmpi sge, %0, %20 : vector<8x128xi32>
    %c4_i32 = arith.constant 4 : i32
    %22 = vector.broadcast %c4_i32 : i32 to vector<8x128xi32>
    %23 = arith.cmpi slt, %0, %22 : vector<8x128xi32>
    %24 = arith.andi %21, %23 : vector<8x128xi1>
    %25 = arith.select %24, %19, %16 : vector<8x128xi1>, vector<8x128xf32>
    %cst_9 = arith.constant dense<0.000000e+00> : vector<8x8xf32>
    %26 = tpu.matmul %17, %17, %cst_9 {dimension_numbers = #tpu.dot_dimension_numbers<[1], [0], [0], [1], [0, 0, 1, 1], [], []>} : vector<8x8xf32>, vector<8x8xf32>, vector<8x8xf32> -> vector<8x8xf32>
    %cst_10 = arith.constant dense<0.000000e+00> : vector<8x128xf32>
    %27 = tpu.matmul %26, %25, %cst_10 {dimension_numbers = #tpu.dot_dimension_numbers<[1], [0], [0], [1], [0, 0, 1, 1], [], []>} : vector<8x8xf32>, vector<8x128xf32>, vector<8x128xf32> -> vector<8x128xf32>
    %c4_i32_11 = arith.constant 4 : i32
    %28 = tpu.dynamic_rotate %27 by %c4_i32_11 dim 1 : vector<8x128xf32>, i32 -> vector<8x128xf32>
    %c4_i32_12 = arith.constant 4 : i32
    %29 = vector.broadcast %c4_i32_12 : i32 to vector<8x128xi32>
    %30 = arith.cmpi sge, %0, %29 : vector<8x128xi32>
    %c8_i32 = arith.constant 8 : i32
    %31 = vector.broadcast %c8_i32 : i32 to vector<8x128xi32>
    %32 = arith.cmpi slt, %0, %31 : vector<8x128xi32>
    %33 = arith.andi %30, %32 : vector<8x128xi1>
    %34 = arith.select %33, %28, %25 : vector<8x128xi1>, vector<8x128xf32>
    %cst_13 = arith.constant dense<0.000000e+00> : vector<8x8xf32>
    %35 = tpu.matmul %26, %26, %cst_13 {dimension_numbers = #tpu.dot_dimension_numbers<[1], [0], [0], [1], [0, 0, 1, 1], [], []>} : vector<8x8xf32>, vector<8x8xf32>, vector<8x8xf32> -> vector<8x8xf32>
    %cst_14 = arith.constant dense<0.000000e+00> : vector<8x128xf32>
    %36 = tpu.matmul %35, %34, %cst_14 {dimension_numbers = #tpu.dot_dimension_numbers<[1], [0], [0], [1], [0, 0, 1, 1], [], []>} : vector<8x8xf32>, vector<8x128xf32>, vector<8x128xf32> -> vector<8x128xf32>
    %c8_i32_15 = arith.constant 8 : i32
    %37 = tpu.dynamic_rotate %36 by %c8_i32_15 dim 1 : vector<8x128xf32>, i32 -> vector<8x128xf32>
    %c8_i32_16 = arith.constant 8 : i32
    %38 = vector.broadcast %c8_i32_16 : i32 to vector<8x128xi32>
    %39 = arith.cmpi sge, %0, %38 : vector<8x128xi32>
    %c16_i32 = arith.constant 16 : i32
    %40 = vector.broadcast %c16_i32 : i32 to vector<8x128xi32>
    %41 = arith.cmpi slt, %0, %40 : vector<8x128xi32>
    %42 = arith.andi %39, %41 : vector<8x128xi1>
    %43 = arith.select %42, %37, %34 : vector<8x128xi1>, vector<8x128xf32>
    %cst_17 = arith.constant dense<0.000000e+00> : vector<8x8xf32>
    %44 = tpu.matmul %35, %35, %cst_17 {dimension_numbers = #tpu.dot_dimension_numbers<[1], [0], [0], [1], [0, 0, 1, 1], [], []>} : vector<8x8xf32>, vector<8x8xf32>, vector<8x8xf32> -> vector<8x8xf32>
    %cst_18 = arith.constant dense<0.000000e+00> : vector<8x128xf32>
    %45 = tpu.matmul %44, %43, %cst_18 {dimension_numbers = #tpu.dot_dimension_numbers<[1], [0], [0], [1], [0, 0, 1, 1], [], []>} : vector<8x8xf32>, vector<8x128xf32>, vector<8x128xf32> -> vector<8x128xf32>
    %c16_i32_19 = arith.constant 16 : i32
    %46 = tpu.dynamic_rotate %45 by %c16_i32_19 dim 1 : vector<8x128xf32>, i32 -> vector<8x128xf32>
    %c16_i32_20 = arith.constant 16 : i32
    %47 = vector.broadcast %c16_i32_20 : i32 to vector<8x128xi32>
    %48 = arith.cmpi sge, %0, %47 : vector<8x128xi32>
    %c32_i32 = arith.constant 32 : i32
    %49 = vector.broadcast %c32_i32 : i32 to vector<8x128xi32>
    %50 = arith.cmpi slt, %0, %49 : vector<8x128xi32>
    %51 = arith.andi %48, %50 : vector<8x128xi1>
    %52 = arith.select %51, %46, %43 : vector<8x128xi1>, vector<8x128xf32>
    %cst_21 = arith.constant dense<0.000000e+00> : vector<8x8xf32>
    %53 = tpu.matmul %44, %44, %cst_21 {dimension_numbers = #tpu.dot_dimension_numbers<[1], [0], [0], [1], [0, 0, 1, 1], [], []>} : vector<8x8xf32>, vector<8x8xf32>, vector<8x8xf32> -> vector<8x8xf32>
    %cst_22 = arith.constant dense<0.000000e+00> : vector<8x128xf32>
    %54 = tpu.matmul %53, %52, %cst_22 {dimension_numbers = #tpu.dot_dimension_numbers<[1], [0], [0], [1], [0, 0, 1, 1], [], []>} : vector<8x8xf32>, vector<8x128xf32>, vector<8x128xf32> -> vector<8x128xf32>
    %c32_i32_23 = arith.constant 32 : i32
    %55 = tpu.dynamic_rotate %54 by %c32_i32_23 dim 1 : vector<8x128xf32>, i32 -> vector<8x128xf32>
    %c32_i32_24 = arith.constant 32 : i32
    %56 = vector.broadcast %c32_i32_24 : i32 to vector<8x128xi32>
    %57 = arith.cmpi sge, %0, %56 : vector<8x128xi32>
    %c64_i32 = arith.constant 64 : i32
    %58 = vector.broadcast %c64_i32 : i32 to vector<8x128xi32>
    %59 = arith.cmpi slt, %0, %58 : vector<8x128xi32>
    %60 = arith.andi %57, %59 : vector<8x128xi1>
    %61 = arith.select %60, %55, %52 : vector<8x128xi1>, vector<8x128xf32>
    %cst_25 = arith.constant dense<0.000000e+00> : vector<8x8xf32>
    %62 = tpu.matmul %53, %53, %cst_25 {dimension_numbers = #tpu.dot_dimension_numbers<[1], [0], [0], [1], [0, 0, 1, 1], [], []>} : vector<8x8xf32>, vector<8x8xf32>, vector<8x8xf32> -> vector<8x8xf32>
    %cst_26 = arith.constant dense<0.000000e+00> : vector<8x128xf32>
    %63 = tpu.matmul %62, %61, %cst_26 {dimension_numbers = #tpu.dot_dimension_numbers<[1], [0], [0], [1], [0, 0, 1, 1], [], []>} : vector<8x8xf32>, vector<8x128xf32>, vector<8x128xf32> -> vector<8x128xf32>
    %c64_i32_27 = arith.constant 64 : i32
    %64 = tpu.dynamic_rotate %63 by %c64_i32_27 dim 1 : vector<8x128xf32>, i32 -> vector<8x128xf32>
    %c64_i32_28 = arith.constant 64 : i32
    %65 = vector.broadcast %c64_i32_28 : i32 to vector<8x128xi32>
    %66 = arith.cmpi sge, %0, %65 : vector<8x128xi32>
    %c128_i32 = arith.constant 128 : i32
    %67 = vector.broadcast %c128_i32 : i32 to vector<8x128xi32>
    %68 = arith.cmpi slt, %0, %67 : vector<8x128xi32>
    %69 = arith.andi %66, %68 : vector<8x128xi1>
    %70 = arith.select %69, %64, %61 : vector<8x128xi1>, vector<8x128xf32>
    %cst_29 = arith.constant dense<0.000000e+00> : vector<8x8xf32>
    %71 = tpu.matmul %62, %62, %cst_29 {dimension_numbers = #tpu.dot_dimension_numbers<[1], [0], [0], [1], [0, 0, 1, 1], [], []>} : vector<8x8xf32>, vector<8x8xf32>, vector<8x8xf32> -> vector<8x8xf32>
    %c0_30 = arith.constant 0 : index
    %c0_31 = arith.constant 0 : index
    %72 = vector.load %arg4[%c0_30, %c0_31] : memref<8x256xf32, #tpu.memory_space<vmem>>, vector<8x128xf32>
    tpu.vector_store %arg4[%c0_30, %c0_31], %70 {strides = array<i32>} : memref<8x256xf32, #tpu.memory_space<vmem>>, vector<8x128xf32>,
    %c0_32 = arith.constant 0 : index
    %c0_33 = arith.constant 0 : index
    %73 = vector.load %arg4[%c0_32, %c0_33] : memref<8x256xf32, #tpu.memory_space<vmem>>, vector<8x128xf32>
    %cst_34 = arith.constant dense<0.000000e+00> : vector<8x128xf32>
    %74 = tpu.matmul %71, %73, %cst_34 {dimension_numbers = #tpu.dot_dimension_numbers<[1], [0], [0], [1], [0, 0, 1, 1], [], []>} : vector<8x8xf32>, vector<8x128xf32>, vector<8x128xf32> -> vector<8x128xf32>
    %c0_35 = arith.constant 0 : index
    %c128 = arith.constant 128 : index
    %75 = vector.load %arg4[%c0_35, %c128] : memref<8x256xf32, #tpu.memory_space<vmem>>, vector<8x128xf32>
    tpu.vector_store %arg4[%c0_35, %c128], %74 {strides = array<i32>} : memref<8x256xf32, #tpu.memory_space<vmem>>, vector<8x128xf32>,
    %c0_36 = arith.constant 0 : index
    %c0_37 = arith.constant 0 : index
    %76 = vector.load %arg2[%c0_36, %c0_37] : memref<1x8xf32, #tpu.memory_space<vmem>>, vector<1x8xf32>
    %c0_38 = arith.constant 0 : index
    %c0_39 = arith.constant 0 : index
    %77 = vector.load %arg4[%c0_38, %c0_39] : memref<8x256xf32, #tpu.memory_space<vmem>>, vector<8x256xf32>
    %cst_40 = arith.constant dense<0.000000e+00> : vector<1x256xf32>
    %78 = tpu.matmul %76, %77, %cst_40 {dimension_numbers = #tpu.dot_dimension_numbers<[1], [0], [0], [1], [0, 0, 1, 1], [], []>} : vector<1x8xf32>, vector<8x256xf32>, vector<1x256xf32> -> vector<1x256xf32>
    %79 = vector.shape_cast %78 : vector<1x256xf32> to vector<1x256xf32>
    %80 = vector.broadcast %79 : vector<1x256xf32> to vector<16x256xf32>
    %81 = tpu.iota {dimensions = array<i32: 0>} : vector<16x256xi32>
    %c1_i32_41 = arith.constant 1 : i32
    %82 = tpu.dynamic_rotate %80 by %c1_i32_41 dim 1 : vector<16x256xf32>, i32 -> vector<16x256xf32>
    %c1_i32_42 = arith.constant 1 : i32
    %83 = vector.broadcast %c1_i32_42 : i32 to vector<16x256xi32>
    %84 = arith.andi %81, %83 : vector<16x256xi32>
    %c0_i32_43 = arith.constant 0 : i32
    %85 = vector.broadcast %c0_i32_43 : i32 to vector<16x256xi32>
    %86 = arith.cmpi ne, %84, %85 : vector<16x256xi32>
    %87 = arith.select %86, %82, %80 : vector<16x256xi1>, vector<16x256xf32>
    %c2_i32_44 = arith.constant 2 : i32
    %88 = tpu.dynamic_rotate %87 by %c2_i32_44 dim 1 : vector<16x256xf32>, i32 -> vector<16x256xf32>
    %c2_i32_45 = arith.constant 2 : i32
    %89 = vector.broadcast %c2_i32_45 : i32 to vector<16x256xi32>
    %90 = arith.andi %81, %89 : vector<16x256xi32>
    %c0_i32_46 = arith.constant 0 : i32
    %91 = vector.broadcast %c0_i32_46 : i32 to vector<16x256xi32>
    %92 = arith.cmpi ne, %90, %91 : vector<16x256xi32>
    %93 = arith.select %92, %88, %87 : vector<16x256xi1>, vector<16x256xf32>
    %c4_i32_47 = arith.constant 4 : i32
    %94 = tpu.dynamic_rotate %93 by %c4_i32_47 dim 1 : vector<16x256xf32>, i32 -> vector<16x256xf32>
    %c4_i32_48 = arith.constant 4 : i32
    %95 = vector.broadcast %c4_i32_48 : i32 to vector<16x256xi32>
    %96 = arith.andi %81, %95 : vector<16x256xi32>
    %c0_i32_49 = arith.constant 0 : i32
    %97 = vector.broadcast %c0_i32_49 : i32 to vector<16x256xi32>
    %98 = arith.cmpi ne, %96, %97 : vector<16x256xi32>
    %99 = arith.select %98, %94, %93 : vector<16x256xi1>, vector<16x256xf32>
    %c8_i32_50 = arith.constant 8 : i32
    %100 = tpu.dynamic_rotate %99 by %c8_i32_50 dim 1 : vector<16x256xf32>, i32 -> vector<16x256xf32>
    %c8_i32_51 = arith.constant 8 : i32
    %101 = vector.broadcast %c8_i32_51 : i32 to vector<16x256xi32>
    %102 = arith.andi %81, %101 : vector<16x256xi32>
    %c0_i32_52 = arith.constant 0 : i32
    %103 = vector.broadcast %c0_i32_52 : i32 to vector<16x256xi32>
    %104 = arith.cmpi ne, %102, %103 : vector<16x256xi32>
    %105 = arith.select %104, %100, %99 : vector<16x256xi1>, vector<16x256xf32>
    %106 = tpu.iota {dimensions = array<i32: 1>} : vector<16x256xi32>
    %107 = arith.cmpi sge, %106, %81 : vector<16x256xi32>
    %cst_53 = arith.constant 0.000000e+00 : f32
    %108 = vector.broadcast %cst_53 : f32 to vector<16x256xf32>
    %109 = arith.select %107, %105, %108 : vector<16x256xi1>, vector<16x256xf32>
    %c0_54 = arith.constant 0 : index
    %c0_55 = arith.constant 0 : index
    %110 = vector.load %arg5[%c0_54, %c0_55] : memref<128x256xf32, #tpu.memory_space<vmem>>, vector<16x256xf32>
    tpu.vector_store %arg5[%c0_54, %c0_55], %109 {strides = array<i32>} : memref<128x256xf32, #tpu.memory_space<vmem>>, vector<16x256xf32>,
    %c0_56 = arith.constant 0 : index
    %c0_57 = arith.constant 0 : index
    %111 = vector.load %arg5[%c0_56, %c0_57] : memref<128x256xf32, #tpu.memory_space<vmem>>, vector<16x256xf32>
    %c16_i32_58 = arith.constant 16 : i32
    %112 = tpu.dynamic_rotate %111 by %c16_i32_58 dim 1 : vector<16x256xf32>, i32 -> vector<16x256xf32>
    %113 = tpu.iota {dimensions = array<i32: 1>} : vector<16x256xi32>
    %c16_i32_59 = arith.constant 16 : i32
    %114 = vector.broadcast %c16_i32_59 : i32 to vector<16x256xi32>
    %115 = arith.cmpi sge, %113, %114 : vector<16x256xi32>
    %cst_60 = arith.constant 0.000000e+00 : f32
    %116 = vector.broadcast %cst_60 : f32 to vector<16x256xf32>
    %117 = arith.select %115, %112, %116 : vector<16x256xi1>, vector<16x256xf32>
    %c16 = arith.constant 16 : index
    %c0_61 = arith.constant 0 : index
    %118 = vector.load %arg5[%c16, %c0_61] : memref<128x256xf32, #tpu.memory_space<vmem>>, vector<16x256xf32>
    tpu.vector_store %arg5[%c16, %c0_61], %117 {strides = array<i32>} : memref<128x256xf32, #tpu.memory_space<vmem>>, vector<16x256xf32>,
    %c0_62 = arith.constant 0 : index
    %c0_63 = arith.constant 0 : index
    %119 = vector.load %arg5[%c0_62, %c0_63] : memref<128x256xf32, #tpu.memory_space<vmem>>, vector<32x256xf32>
    %c32_i32_64 = arith.constant 32 : i32
    %120 = tpu.dynamic_rotate %119 by %c32_i32_64 dim 1 : vector<32x256xf32>, i32 -> vector<32x256xf32>
    %121 = tpu.iota {dimensions = array<i32: 1>} : vector<32x256xi32>
    %c32_i32_65 = arith.constant 32 : i32
    %122 = vector.broadcast %c32_i32_65 : i32 to vector<32x256xi32>
    %123 = arith.cmpi sge, %121, %122 : vector<32x256xi32>
    %cst_66 = arith.constant 0.000000e+00 : f32
    %124 = vector.broadcast %cst_66 : f32 to vector<32x256xf32>
    %125 = arith.select %123, %120, %124 : vector<32x256xi1>, vector<32x256xf32>
    %c32 = arith.constant 32 : index
    %c0_67 = arith.constant 0 : index
    %126 = vector.load %arg5[%c32, %c0_67] : memref<128x256xf32, #tpu.memory_space<vmem>>, vector<32x256xf32>
    tpu.vector_store %arg5[%c32, %c0_67], %125 {strides = array<i32>} : memref<128x256xf32, #tpu.memory_space<vmem>>, vector<32x256xf32>,
    %c0_68 = arith.constant 0 : index
    %c0_69 = arith.constant 0 : index
    %127 = vector.load %arg5[%c0_68, %c0_69] : memref<128x256xf32, #tpu.memory_space<vmem>>, vector<64x256xf32>
    %c64_i32_70 = arith.constant 64 : i32
    %128 = tpu.dynamic_rotate %127 by %c64_i32_70 dim 1 : vector<64x256xf32>, i32 -> vector<64x256xf32>
    %129 = tpu.iota {dimensions = array<i32: 1>} : vector<64x256xi32>
    %c64_i32_71 = arith.constant 64 : i32
    %130 = vector.broadcast %c64_i32_71 : i32 to vector<64x256xi32>
    %131 = arith.cmpi sge, %129, %130 : vector<64x256xi32>
    %cst_72 = arith.constant 0.000000e+00 : f32
    %132 = vector.broadcast %cst_72 : f32 to vector<64x256xf32>
    %133 = arith.select %131, %128, %132 : vector<64x256xi1>, vector<64x256xf32>
    %c64 = arith.constant 64 : index
    %c0_73 = arith.constant 0 : index
    %134 = vector.load %arg5[%c64, %c0_73] : memref<128x256xf32, #tpu.memory_space<vmem>>, vector<64x256xf32>
    tpu.vector_store %arg5[%c64, %c0_73], %133 {strides = array<i32>} : memref<128x256xf32, #tpu.memory_space<vmem>>, vector<64x256xf32>,
    %c0_74 = arith.constant 0 : index
    %c0_75 = arith.constant 0 : index
    %135 = vector.load %arg5[%c0_74, %c0_75] : memref<128x256xf32, #tpu.memory_space<vmem>>, vector<128x256xf32>
    %c0_76 = arith.constant 0 : index
    %c0_77 = arith.constant 0 : index
    %136 = vector.load %arg3[%c0_76, %c0_77] : memref<128x256xf32, #tpu.memory_space<vmem>>, vector<128x256xf32>
    tpu.vector_store %arg3[%c0_76, %c0_77], %135 {strides = array<i32>} : memref<128x256xf32, #tpu.memory_space<vmem>>, vector<128x256xf32>,
    return
  }
}

</mosaic_0001>

<bundles_post_ra>
// kernel: tpu_custom_call.1
= control target key start
LH: loop header
LB: loop body
LE: loop exit
PB: predicated region body
PF: predicated region fallthrough
CT: control target
= control target key end

     0   :  { %v1730_v1 = vmov 0   ;;  %v1731_v2 = vmov 0.0   ;;  %s2045_s0 = inlined_call_operand.vmem [shape: f32[8,8], index: 0, kind: input, shape index: {}]   ;;  %s2046_s1 = inlined_call_operand.vmem [shape: f32[8,1], index: 1, kind: input, shape index: {}]   ;;  %s2047_s2 = inlined_call_operand.vmem [shape: f32[1,8], index: 2, kind: input, shape index: {}]   ;;  %s2048_s3 = inlined_call_operand.hbm [shape: f32[128,256], index: 3, kind: output, shape index: {}]  }
   0x1   :  { %v18_v0 = vld [vmem:[%s2046_s1] sm:$0xff]  ;;  %1707 = vset.pattern.permute.xlu0 %v1730_v1  ;;  %1620 = vmatprep.subr.mxu0 %v1731_v2 }
   0x2   :  { %8 = vsyncpa [#allocation5], 0  ;;  %21 = vperm.xlu0 %1707, %v18_v0   ;;  %vm1732_vm0 = vmmov 0   ;;  %v25_v3 = vld [vmem:[%s2045_s0] sm:$0xff]  ;;  %1625 = vmatprep.subr.mxu1 %v1731_v2  ;;  %vm26_vm1 = vcmask 64512   ;;  %v15_v4 = vlaneseq  ;;  %s1733_s0 = smov 1  }
   0x3   :  { %1622 = vmatprep.mubr.msk.f32.mxu0 %vm1732_vm0, %v1731_v2  ;;  %1627 = vmatprep.mubr.msk.f32.mxu1 %vm1732_vm0, %v1731_v2  ;;  %s1734_s1 = smov 2   ;;  %s1735_s16 = smov 4   ;;  %v1146_v51 = vld [vmem:[%s2047_s2] sm:$0x1] }
   0x4   :  { %1626 = vmatpush3.msra.mxu1 %v25_v3  ;;  %v1779_v5 = vand.u32 127, %v15_v4  ;;  %s1736_s17 = smov 8   ;;  %s1737_s18 = smov 16   ;;  %v1880_v53 = vshrl.u32 %v15_v4, 7 }
   0x5   :  { %1628 = vmatmul.mubr.msk.f32.vlgmr.msra.gmra.mxu1 %vm26_vm1, %v25_v3  ;;  %1635 = vmatprep.subr.mxu1 %v1731_v2  ;;  %s1738_s19 = smov 32   ;;  %s1739_s20 = smov 64  }
   0x6   :  { %1637 = vmatprep.mubr.msk.f32.mxu1 %vm1732_vm0, %v1731_v2  ;;  %vm17_vm2 = vcmp.eq.s32.totalorder %v1779_v5, 0  ;;  %vm102_vm3 = vcmp.ge.s32.totalorder %v1779_v5, 1  ;;  %vm103_vm4 = vcmp.lt.s32.totalorder %v1779_v5, 2  ;;  %vm251_vm6 = vcmp.ge.s32.totalorder %v1779_v5, 2  ;;  %s1740_s2 = smov [#allocation4]  }
   0x7   :  { %vm104_vm5 = vmand %vm102_vm3, %vm103_vm4  ;;  %vm252_vm7 = vcmp.lt.s32.totalorder %v1779_v5, 4  ;;  %vm400_vm9 = vcmp.ge.s32.totalorder %v1779_v5, 4  ;;  %vm401_vm10 = vcmp.lt.s32.totalorder %v1779_v5, 8  ;;  %vm549_vm12 = vcmp.ge.s32.totalorder %v1779_v5, 8  ;;  %s1562_s23 = sshll.u32 %s1740_s2, 4  ;;  %s1563_s23 = int_to_ptr.vmem [resolvable:$true] %s1562_s23 }
   0x8   :  { %vm253_vm8 = vmand %vm251_vm6, %vm252_vm7  ;;  %vm550_vm13 = vcmp.lt.s32.totalorder %v1779_v5, 16  ;;  %vm698_vm15 = vcmp.ge.s32.totalorder %v1779_v5, 16  ;;  %vm848_vm6 = vcmp.lt.s32.totalorder %v1779_v5, 64  ;;  %v1225_v54 = vsub.s32 0, %v1880_v53  ;;  %s1708_s24 = scalar_lea.vmem %s1563_s23, 4096  ;;  %p1713_p1 = scmp.lt.s32.totalorder %s1563_s23, %s1563_s23 }
   0x9   :  { %vm402_vm11 = vmand %vm400_vm9, %vm401_vm10  ;;  %vm996_vm9 = vcmp.ge.s32.totalorder %v1779_v5, 64  ;;  %v1886_v59 = vadd.s32 8, %v1880_v53  ;;  %v1241_v61 = vand.u32 1, %v1880_v53  ;;  %p1709_p0 = scmp.ne.s32.totalorder %s1563_s23, %s1708_s24  ;;  %p1714_p2 = scmp.lt.s32.totalorder %s1708_s24, %s1708_s24 }
   0xa   :  { %vm551_vm14 = vmand %vm549_vm12, %vm550_vm13 }
   0xb   :  { %v1242_v60 = vand.u32 1, %v1886_v59  ;;  %p1715_p3 = por %p1714_p2, %p1713_p1 }
   0xd   :  { %p1716_p4 = pnand %p1715_p3, %p1709_p0 }
  0x7d   :  { %v22_v6 = vpop.permute.xlu0 %21 }
  0x7e   :  { %1621 = vmatpush3.msk.msra.mxu0 %vm17_vm2, %v22_v6  ;;  %v24_v13 = vsel %vm17_vm2, %v22_v6, 0.0  ;;  %vm699_vm2 = vcmp.lt.s32.totalorder %v1779_v5, 32 }
  0x7f   :  { %1623 = vmatmul.mubr.msk.f32.vlgmr.msra.gmra.mxu0 %vm26_vm1, %v25_v3  ;;  %1630 = vmatprep.subr.mxu0 %v1731_v2  ;;  %vm700_vm3 = vmand %vm698_vm15, %vm699_vm2 }
  0x80   :  { %1632 = vmatprep.mubr.msk.f32.mxu0 %vm1732_vm0, %v1731_v2 }
  0xc5   :  { %v172_v7 = vpop.f32.mrf.mxu1 }
  0xc6   :  { %1636 = vmatpush3.msra.mxu1 %v172_v7 }
  0xc7   :  { %1638 = vmatmul.mubr.msk.f32.vlgmr.msra.gmra.mxu1 %vm26_vm1, %v172_v7  ;;  %v1629_v8 = vpop.f32.mrf.mxu1  ;;  %1645 = vmatprep.subr.mxu1 %v1731_v2 }
  0xc8   :  { %1647 = vmatprep.mubr.msk.f32.mxu1 %vm1732_vm0, %v1731_v2  ;;  %v1261_v8 = vand.u32 2, %v1880_v53 }
 0x13f   :  { %v96_v9 = vpop.f32.mrf.mxu0 }
 0x140   :  { %100 = vrot.lane.b32.xlu0 %v96_v9, %s1733_s0 }
 0x141   :  { %v1624_v10 = vpop.f32.mrf.mxu0 }
 0x187   :  { %v321_v11 = vpop.f32.mrf.mxu1 }
 0x188   :  { %1646 = vmatpush3.msra.mxu1 %v321_v11 }
 0x189   :  { %1648 = vmatmul.mubr.msk.f32.vlgmr.msra.gmra.mxu1 %vm26_vm1, %v321_v11  ;;  %v1639_v12 = vpop.f32.mrf.mxu1  ;;  %1655 = vmatprep.subr.mxu1 %v1731_v2 }
 0x18a   :  { %1657 = vmatprep.mubr.msk.f32.mxu1 %vm1732_vm0, %v1731_v2 }
 0x1b2   :  { %v101_v14 = vpop.permute.xlu0 %100 }
 0x1b3   :  { %v105_v15 = vsel %vm104_vm5, %v101_v14, %v24_v13  ;;  %vm847_vm5 = vcmp.ge.s32.totalorder %v1779_v5, 32 }
 0x1b4   :  { %1631 = vmatpush3.msra.mxu0 %v105_v15 }
 0x1b5   :  { %1633 = vmatmul.mubr.msk.f32.vlgmr.msra.gmra.mxu0 %vm26_vm1, %v172_v7  ;;  %1640 = vmatprep.subr.mxu0 %v1731_v2  ;;  %v1262_v7 = vand.u32 2, %v1886_v59 }
 0x1b6   :  { %1642 = vmatprep.mubr.msk.f32.mxu0 %vm1732_vm0, %v1731_v2 }
 0x1b7   :  { %vm1264_vm12 = vcmp.ne.s32.totalorder %v1262_v7, 0 }
 0x249   :  { %v470_v16 = vpop.f32.mrf.mxu1 }
 0x24a   :  { %1656 = vmatpush3.msra.mxu1 %v470_v16 }
 0x24b   :  { %1658 = vmatmul.mubr.msk.f32.vlgmr.msra.gmra.mxu1 %vm26_vm1, %v470_v16  ;;  %v1649_v17 = vpop.f32.mrf.mxu1  ;;  %1665 = vmatprep.subr.mxu1 %v1731_v2 }
 0x24c   :  { %1667 = vmatprep.mubr.msk.f32.mxu1 %vm1732_vm0, %v1731_v2 }
 0x275   :  { %v245_v18 = vpop.f32.mrf.mxu0 }
 0x276   :  { %249 = vrot.lane.b32.xlu1 %v245_v18, %s1734_s1 }
 0x277   :  { %v1634_v19 = vpop.f32.mrf.mxu0 }
 0x2e8   :  { %v250_v20 = vpop.permute.xlu1 %249 }
 0x2e9   :  { %v254_v21 = vsel %vm253_vm8, %v250_v20, %v105_v15  ;;  %vm849_vm8 = vmand %vm847_vm5, %vm848_vm6 }
 0x2ea   :  { %1641 = vmatpush3.msra.mxu0 %v254_v21 }
 0x2eb   :  { %1643 = vmatmul.mubr.msk.f32.vlgmr.msra.gmra.mxu0 %vm26_vm1, %v321_v11  ;;  %1650 = vmatprep.subr.mxu0 %v1731_v2 }
 0x2ec   :  { %1652 = vmatprep.mubr.msk.f32.mxu0 %vm1732_vm0, %v1731_v2 }
 0x30b   :  { %v619_v22 = vpop.f32.mrf.mxu1 }
 0x30c   :  { %1666 = vmatpush3.msra.mxu1 %v619_v22 }
 0x30d   :  { %1668 = vmatmul.mubr.msk.f32.vlgmr.msra.gmra.mxu1 %vm26_vm1, %v619_v22  ;;  %v1659_v23 = vpop.f32.mrf.mxu1  ;;  %1675 = vmatprep.subr.mxu1 %v1731_v2 }
 0x30e   :  { %1677 = vmatprep.mubr.msk.f32.mxu1 %vm1732_vm0, %v1731_v2 }
 0x3ab   :  { %v394_v24 = vpop.f32.mrf.mxu0 }
 0x3ac   :  { %398 = vrot.lane.b32.xlu1 %v394_v24, %s1735_s16 }
 0x3ad   :  { %v1644_v25 = vpop.f32.mrf.mxu0 }
 0x3cd   :  { %v768_v26 = vpop.f32.mrf.mxu1 }
 0x3ce   :  { %1676 = vmatpush3.msra.mxu1 %v768_v26 }
 0x3cf   :  { %1678 = vmatmul.mubr.msk.f32.vlgmr.msra.gmra.mxu1 %vm26_vm1, %v768_v26  ;;  %v1669_v27 = vpop.f32.mrf.mxu1  ;;  %1685 = vmatprep.subr.mxu1 %v1731_v2 }
 0x3d0   :  { %1687 = vmatprep.mubr.msk.f32.mxu1 %vm1732_vm0, %v1731_v2 }
 0x41e   :  { %v399_v28 = vpop.permute.xlu1 %398 }
 0x41f   :  { %v403_v29 = vsel %vm402_vm11, %v399_v28, %v254_v21  ;;  %vm1243_vm11 = vcmp.ne.s32.totalorder %v1241_v61, 0  ;;  %v1282_v21 = vand.u32 4, %v1886_v59 }
 0x420   :  { %1651 = vmatpush3.msra.mxu0 %v403_v29 }
 0x421   :  { %1653 = vmatmul.mubr.msk.f32.vlgmr.msra.gmra.mxu0 %vm26_vm1, %v470_v16  ;;  %1660 = vmatprep.subr.mxu0 %v1731_v2 }
 0x422   :  { %1662 = vmatprep.mubr.msk.f32.mxu0 %vm1732_vm0, %v1731_v2 }
 0x48f   :  { %v917_v30 = vpop.f32.mrf.mxu1 }
 0x490   :  { %1686 = vmatpush3.msra.mxu1 %v917_v30 }
 0x491   :  { %1688 = vmatmul.mubr.msk.f32.vlgmr.msra.gmra.mxu1 %vm26_vm1, %v917_v30  ;;  %v1679_v31 = vpop.f32.mrf.mxu1 }
 0x492   :  { %1216 = vmatprep.mubr.f32.mxu1 %v1731_v2 }
 0x4e1   :  { %v543_v32 = vpop.f32.mrf.mxu0 }
 0x4e2   :  { %547 = vrot.lane.b32.xlu0 %v543_v32, %s1736_s17 }
 0x4e3   :  { %v1654_v33 = vpop.f32.mrf.mxu0 }
 0x551   :  { %v1066_v36 = vpop.f32.mrf.mxu1 }
 0x553   :  { %v1689_v37 = vpop.f32.mrf.mxu1 }
 0x554   :  { %v548_v34 = vpop.permute.xlu0 %547 }
 0x555   :  { %v552_v35 = vsel %vm551_vm14, %v548_v34, %v403_v29  ;;  %vm1263_vm14 = vcmp.ne.s32.totalorder %v1261_v8, 0 }
 0x556   :  { %1661 = vmatpush3.msra.mxu0 %v552_v35 }
 0x557   :  { %1663 = vmatmul.mubr.msk.f32.vlgmr.msra.gmra.mxu0 %vm26_vm1, %v619_v22  ;;  %1670 = vmatprep.subr.mxu0 %v1731_v2  ;;  %v1281_v22 = vand.u32 4, %v1880_v53 }
 0x558   :  { %1672 = vmatprep.mubr.msk.f32.mxu0 %vm1732_vm0, %v1731_v2 }
 0x617   :  { %v692_v38 = vpop.f32.mrf.mxu0 }
 0x618   :  { %696 = vrot.lane.b32.xlu1 %v692_v38, %s1737_s18 }
 0x619   :  { %v1664_v39 = vpop.f32.mrf.mxu0 }
 0x68a   :  { %v697_v40 = vpop.permute.xlu1 %696 }
 0x68b   :  { %v701_v41 = vsel %vm700_vm3, %v697_v40, %v552_v35  ;;  %vm1284_vm3 = vcmp.ne.s32.totalorder %v1282_v21, 0 }
 0x68c   :  { %1671 = vmatpush3.msra.mxu0 %v701_v41 }
 0x68d   :  { %1673 = vmatmul.mubr.msk.f32.vlgmr.msra.gmra.mxu0 %vm26_vm1, %v768_v26  ;;  %1680 = vmatprep.subr.mxu0 %v1731_v2 }
 0x68e   :  { %1682 = vmatprep.mubr.msk.f32.mxu0 %vm1732_vm0, %v1731_v2 }
 0x74d   :  { %v841_v42 = vpop.f32.mrf.mxu0 }
 0x74e   :  { %845 = vrot.lane.b32.xlu0 %v841_v42, %s1738_s19 }
 0x74f   :  { %v1674_v43 = vpop.f32.mrf.mxu0 }
 0x7c0   :  { %v846_v44 = vpop.permute.xlu0 %845 }
 0x7c1   :  { %v850_v45 = vsel %vm849_vm8, %v846_v44, %v701_v41  ;;  %vm1310_vm8 = vcmp.ge.s32.totalorder %v1779_v5, %v1880_v53 }
 0x7c2   :  { %1681 = vmatpush3.msra.mxu0 %v850_v45 }
 0x7c3   :  { %1683 = vmatmul.mubr.msk.f32.vlgmr.msra.gmra.mxu0 %vm26_vm1, %v917_v30  ;;  %1690 = vmatprep.subr.mxu0 %v1731_v2 }
 0x7c4   :  { %1692 = vmatprep.mubr.msk.f32.mxu0 %vm1732_vm0, %v1731_v2  ;;  %vm1238_vm0 = vcmp.lt.s32.totalorder %v1779_v5, 1 }
 0x883   :  { %v990_v46 = vpop.f32.mrf.mxu0 }
 0x884   :  { %994 = vrot.lane.b32.xlu1 %v990_v46, %s1739_s20 }
 0x885   :  { %v1684_v47 = vpop.f32.mrf.mxu0 }
 0x8f6   :  { %v995_v48 = vpop.permute.xlu1 %994 }
 0x8f7   :  { %v999_v49 = vsel %vm996_vm9, %v995_v48, %v850_v45 }
 0x8f8   :  { %1691 = vmatpush3.msra.mxu0 %v999_v49 }
 0x8f9   :  { %1693 = vmatmul.mubr.msk.f32.vlgmr.msra.gmra.mxu0 %vm26_vm1, %v1066_v36 }
 0x9b9   :  { %v1141_v50 = vpop.f32.mrf.mxu0 }
 0x9ba   :  { %1182 = vmatprep.subr.mxu1 %v1141_v50 }
 0x9bb   :  { %v1694_v52 = vpop.f32.mrf.mxu0  ;;  %1183 = vmatpush1.msra.mxu1 %v999_v49 }
 0x9bc   :  { %1589 = vmatmul.mubr.msk.f32.vlgmr.msra.gmra.mxu1 %vm26_vm1, %v1146_v51  ;;  %vm1244_vm1 = vcmp.ne.s32.totalorder %v1242_v60, 0 }
 0xa7c   :  { %v1218_v55 = vpop.f32.mrf.mxu1 }
 0xa7d   :  { %v1226_v56 = vrot.slane %v1218_v55, %v1225_v54 }
 0xa7e   :  { %v1220_v57 = vpop.f32.mrf.mxu1 }
 0xa7f   :  { %v1230_v58 = vrot.slane %v1220_v57, %v1225_v54  ;;  %1234 = vrot.lane.b32.xlu0 %v1226_v56, %s1733_s0 }
 0xa81   :  { %1236 = vrot.lane.b32.xlu1 %v1230_v58, %s1733_s0 }
 0xaf1   :  { %v1235_v62 = vpop.permute.xlu0 %1234 }
 0xaf3   :  { %v1237_v63 = vpop.permute.xlu1 %1236 }
 0xaf4   :  { %v1239_v0 = vsel %vm1238_vm0, %v1235_v62, %v1237_v63  ;;  %v1240_v1 = vsel %vm1238_vm0, %v1237_v63, %v1235_v62  ;;  %vm1312_vm0 = vcmp.ge.s32.totalorder %v1779_v5, %v1886_v59 }
 0xaf5   :  { %v1247_v2 = vsel %vm1244_vm1, %v1240_v1, %v1226_v56  ;;  %v1248_v3 = vsel %vm1244_vm1, %v1239_v0, %v1230_v58  ;;  %v1245_v4 = vsel %vm1243_vm11, %v1240_v1, %v1226_v56  ;;  %v1246_v6 = vsel %vm1243_vm11, %v1239_v0, %v1230_v58 }
 0xaf6   :  { %1251 = vrot.lane.b32.xlu0 %v1247_v2, %s1734_s1  ;;  %1255 = vrot.lane.b32.xlu1 %v1248_v3, %s1734_s1 }
 0xafa   :  { %1249 = vrot.lane.b32.xlu0 %v1245_v4, %s1734_s1  ;;  %1253 = vrot.lane.b32.xlu1 %v1246_v6, %s1734_s1 }
 0xb68   :  { %v1252_v9 = vpop.permute.xlu0 %1251  ;;  %v1256_v10 = vpop.permute.xlu1 %1255 }
 0xb69   :  { %v1258_v11 = vsel %vm103_vm4, %v1252_v9, %v1256_v10  ;;  %v1260_v12 = vsel %vm103_vm4, %v1256_v10, %v1252_v9 }
 0xb6a   :  { %v1267_v13 = vsel %vm1264_vm12, %v1260_v12, %v1247_v2  ;;  %v1268_v14 = vsel %vm1264_vm12, %v1258_v11, %v1248_v3 }
 0xb6b   :  { %1271 = vrot.lane.b32.xlu0 %v1267_v13, %s1735_s16  ;;  %1275 = vrot.lane.b32.xlu1 %v1268_v14, %s1735_s16 }
 0xb6c   :  { %v1250_v15 = vpop.permute.xlu0 %1249  ;;  %v1254_v16 = vpop.permute.xlu1 %1253 }
 0xb6d   :  { %v1257_v17 = vsel %vm103_vm4, %v1250_v15, %v1254_v16  ;;  %v1259_v18 = vsel %vm103_vm4, %v1254_v16, %v1250_v15  ;;  %vm1283_vm4 = vcmp.ne.s32.totalorder %v1281_v22, 0 }
 0xb6e   :  { %v1265_v19 = vsel %vm1263_vm14, %v1259_v18, %v1245_v4  ;;  %v1266_v20 = vsel %vm1263_vm14, %v1257_v17, %v1246_v6 }
 0xb6f   :  { %1269 = vrot.lane.b32.xlu0 %v1265_v19, %s1735_s16  ;;  %1273 = vrot.lane.b32.xlu1 %v1266_v20, %s1735_s16 }
 0xbdd   :  { %v1272_v23 = vpop.permute.xlu0 %1271  ;;  %v1276_v24 = vpop.permute.xlu1 %1275 }
 0xbde   :  { %v1278_v25 = vsel %vm252_vm7, %v1272_v23, %v1276_v24  ;;  %v1280_v26 = vsel %vm252_vm7, %v1276_v24, %v1272_v23 }
 0xbdf   :  { %v1287_v27 = vsel %vm1284_vm3, %v1280_v26, %v1267_v13  ;;  %v1288_v28 = vsel %vm1284_vm3, %v1278_v25, %v1268_v14 }
 0xbe0   :  { %1291 = vrot.lane.b32.xlu0 %v1287_v27, %s1736_s17  ;;  %1295 = vrot.lane.b32.xlu1 %v1288_v28, %s1736_s17 }
 0xbe1   :  { %v1270_v29 = vpop.permute.xlu0 %1269  ;;  %v1274_v30 = vpop.permute.xlu1 %1273 }
 0xbe2   :  { %v1277_v31 = vsel %vm252_vm7, %v1270_v29, %v1274_v30  ;;  %v1279_v32 = vsel %vm252_vm7, %v1274_v30, %v1270_v29 }
 0xbe3   :  { %v1285_v33 = vsel %vm1283_vm4, %v1279_v32, %v1265_v19  ;;  %v1286_v34 = vsel %vm1283_vm4, %v1277_v31, %v1266_v20 }
 0xbe4   :  { %v1314_v35 = vsel %vm1310_vm8, %v1285_v33, 0.0  ;;  %1526 = vst [vmem:[#allocation4 + $0x8] sm:$0xff] %v1286_v34 }
 0xbe5   :  { %1326 = vrot.lane.b32.xlu0 %v1314_v35, %s1737_s18  ;;  %1525 = vst [vmem:[#allocation4] sm:$0xff] %v1314_v35 }
 0xbe9   :  { %1330 = vrot.lane.b32.xlu0 %v1286_v34, %s1737_s18 }
 0xbed   :  { %1355 = vrot.lane.b32.xlu0 %v1314_v35, %s1738_s19 }
 0xbf1   :  { %1363 = vrot.lane.b32.xlu0 %v1286_v34, %s1738_s19 }
 0xc52   :  { %v1292_v36 = vpop.permute.xlu0 %1291  ;;  %v1296_v37 = vpop.permute.xlu1 %1295 }
 0xc53   :  { %v1298_v38 = vsel %vm401_vm10, %v1292_v36, %v1296_v37  ;;  %v1300_v39 = vsel %vm401_vm10, %v1296_v37, %v1292_v36 }
 0xc54   :  { %v1316_v40 = vsel %vm1312_vm0, %v1300_v39, 0.0  ;;  %1528 = vst [vmem:[#allocation4 + $0x18] sm:$0xff] %v1298_v38 }
 0xc55   :  { %1527 = vst [vmem:[#allocation4 + $0x10] sm:$0xff] %v1316_v40  ;;  %1328 = vrot.lane.b32.xlu1 %v1316_v40, %s1737_s18 }
 0xc57   :  { %v1327_v41 = vpop.permute.xlu0 %1326 }
 0xc59   :  { %1332 = vrot.lane.b32.xlu1 %v1298_v38, %s1737_s18 }
 0xc5b   :  { %v1331_v42 = vpop.permute.xlu0 %1330 }
 0xc5c   :  { %v1336_v43 = vsel %vm550_vm13, %v1331_v42, %v1327_v41  ;;  %v1334_v44 = vsel %vm550_vm13, %v1327_v41, %v1331_v42 }
 0xc5d   :  { %1365 = vrot.lane.b32.xlu1 %v1298_v38, %s1738_s19  ;;  %v1339_v45 = vsel %vm698_vm15, %v1336_v43, 0.0  ;;  %1530 = vst [vmem:[#allocation4 + $0x28] sm:$0xff] %v1334_v44 }
 0xc5e   :  { %1359 = vrot.lane.b32.xlu0 %v1339_v45, %s1738_s19  ;;  %1529 = vst [vmem:[#allocation4 + $0x20] sm:$0xff] %v1339_v45 }
 0xc5f   :  { %v1356_v46 = vpop.permute.xlu0 %1355 }
 0xc61   :  { %1357 = vrot.lane.b32.xlu1 %v1316_v40, %s1738_s19 }
 0xc62   :  { %1367 = vrot.lane.b32.xlu0 %v1334_v44, %s1738_s19 }
 0xc63   :  { %v1364_v47 = vpop.permute.xlu0 %1363 }
 0xc64   :  { %v1375_v48 = vsel %vm699_vm2, %v1364_v47, %v1356_v46  ;;  %v1371_v49 = vsel %vm699_vm2, %v1356_v46, %v1364_v47 }
 0xc65   :  { %v1380_v50 = vsel %vm847_vm5, %v1375_v48, 0.0  ;;  %1534 = vst [vmem:[#allocation4 + $0x48] sm:$0xff] %v1371_v49 }
 0xc66   :  { %1412 = vrot.lane.b32.xlu0 %v1314_v35, %s1739_s20  ;;  %1533 = vst [vmem:[#allocation4 + $0x40] sm:$0xff] %v1380_v50 }
 0xc6a   :  { %1416 = vrot.lane.b32.xlu0 %v1339_v45, %s1739_s20 }
 0xc6e   :  { %1420 = vrot.lane.b32.xlu0 %v1380_v50, %s1739_s20 }
 0xc72   :  { %1428 = vrot.lane.b32.xlu0 %v1286_v34, %s1739_s20 }
 0xc76   :  { %1432 = vrot.lane.b32.xlu0 %v1334_v44, %s1739_s20 }
 0xc7a   :  { %1436 = vrot.lane.b32.xlu0 %v1371_v49, %s1739_s20 }
 0xcc7   :  { %v1329_v51 = vpop.permute.xlu1 %1328 }
 0xccb   :  { %v1333_v52 = vpop.permute.xlu1 %1332 }
 0xccc   :  { %v1337_v53 = vsel %vm550_vm13, %v1333_v52, %v1329_v51  ;;  %v1335_v54 = vsel %vm550_vm13, %v1329_v51, %v1333_v52 }
 0xccd   :  { %v1341_v55 = vsel %vm698_vm15, %v1337_v53, 0.0  ;;  %1532 = vst [vmem:[#allocation4 + $0x38] sm:$0xff] %v1335_v54 }
 0xcce   :  { %1361 = vrot.lane.b32.xlu1 %v1341_v55, %s1738_s19  ;;  %1531 = vst [vmem:[#allocation4 + $0x30] sm:$0xff] %v1341_v55 }
 0xccf   :  { %v1366_v56 = vpop.permute.xlu1 %1365 }
 0xcd0   :  { %v1360_v57 = vpop.permute.xlu0 %1359 }
 0xcd2   :  { %1369 = vrot.lane.b32.xlu1 %v1335_v54, %s1738_s19 }
 0xcd3   :  { %v1358_v58 = vpop.permute.xlu1 %1357 }
 0xcd4   :  { %v1376_v59 = vsel %vm699_vm2, %v1366_v56, %v1358_v58  ;;  %v1368_v60 = vpop.permute.xlu0 %1367  ;;  %v1372_v61 = vsel %vm699_vm2, %v1358_v58, %v1366_v56 }
 0xcd5   :  { %v1377_v62 = vsel %vm699_vm2, %v1368_v60, %v1360_v57  ;;  %v1373_v63 = vsel %vm699_vm2, %v1360_v57, %v1368_v60  ;;  %1536 = vst [vmem:[#allocation4 + $0x58] sm:$0xff] %v1372_v61  ;;  %v1382_v0 = vsel %vm847_vm5, %v1376_v59, 0.0 }
 0xcd6   :  { %1414 = vrot.lane.b32.xlu1 %v1316_v40, %s1739_s20  ;;  %v1384_v1 = vsel %vm847_vm5, %v1377_v62, 0.0  ;;  %1538 = vst [vmem:[#allocation4 + $0x68] sm:$0xff] %v1373_v63  ;;  %1535 = vst [vmem:[#allocation4 + $0x50] sm:$0xff] %v1382_v0 }
 0xcd7   :  { %1424 = vrot.lane.b32.xlu0 %v1384_v1, %s1739_s20  ;;  %1537 = vst [vmem:[#allocation4 + $0x60] sm:$0xff] %v1384_v1 }
 0xcd8   :  { %v1413_v2 = vpop.permute.xlu0 %1412 }
 0xcda   :  { %1430 = vrot.lane.b32.xlu1 %v1298_v38, %s1739_s20 }
 0xcdb   :  { %1440 = vrot.lane.b32.xlu0 %v1373_v63, %s1739_s20 }
 0xcdc   :  { %v1417_v3 = vpop.permute.xlu0 %1416 }
 0xcde   :  { %1434 = vrot.lane.b32.xlu1 %v1335_v54, %s1739_s20 }
 0xce0   :  { %v1421_v4 = vpop.permute.xlu0 %1420 }
 0xce2   :  { %1438 = vrot.lane.b32.xlu1 %v1372_v61, %s1739_s20 }
 0xce4   :  { %v1429_v6 = vpop.permute.xlu0 %1428 }
 0xce5   :  { %v1444_v7 = vsel %vm848_vm6, %v1413_v2, %v1429_v6  ;;  %v1452_v8 = vsel %vm848_vm6, %v1429_v6, %v1413_v2 }
 0xce6   :  { %v1461_v9 = vsel %vm996_vm9, %v1452_v8, 0.0  ;;  %1542 = vst [vmem:[#allocation4 + $0x88] sm:$0xff] %v1444_v7  ;;  %1418 = vrot.lane.b32.xlu1 %v1341_v55, %s1739_s20 }
 0xce7   :  { %1541 = vst [vmem:[#allocation4 + $0x80] sm:$0xff] %v1461_v9 }
 0xce8   :  { %v1433_v10 = vpop.permute.xlu0 %1432 }
 0xce9   :  { %v1446_v11 = vsel %vm848_vm6, %v1417_v3, %v1433_v10  ;;  %v1454_v12 = vsel %vm848_vm6, %v1433_v10, %v1417_v3 }
 0xcea   :  { %v1465_v13 = vsel %vm996_vm9, %v1454_v12, 0.0  ;;  %1546 = vst [vmem:[#allocation4 + $0xa8] sm:$0xff] %v1446_v11  ;;  %1422 = vrot.lane.b32.xlu1 %v1382_v0, %s1739_s20 }
 0xceb   :  { %1545 = vst [vmem:[#allocation4 + $0xa0] sm:$0xff] %v1465_v13 }
 0xcec   :  { %v1437_v14 = vpop.permute.xlu0 %1436 }
 0xced   :  { %v1448_v15 = vsel %vm848_vm6, %v1421_v4, %v1437_v14  ;;  %v1456_v16 = vsel %vm848_vm6, %v1437_v14, %v1421_v4 }
 0xcee   :  { %v1469_v17 = vsel %vm996_vm9, %v1456_v16, 0.0  ;;  %1550 = vst [vmem:[#allocation4 + $0xc8] sm:$0xff] %v1448_v15 }
 0xcef   :  { %1549 = vst [vmem:[#allocation4 + $0xc0] sm:$0xff] %v1469_v17 }
 0xd40   :  { %v1362_v18 = vpop.permute.xlu1 %1361 }
 0xd44   :  { %v1370_v19 = vpop.permute.xlu1 %1369 }
 0xd45   :  { %v1378_v20 = vsel %vm699_vm2, %v1370_v19, %v1362_v18  ;;  %v1374_v21 = vsel %vm699_vm2, %v1362_v18, %v1370_v19 }
 0xd46   :  { %v1386_v22 = vsel %vm847_vm5, %v1378_v20, 0.0  ;;  %1540 = vst [vmem:[#allocation4 + $0x78] sm:$0xff] %v1374_v21 }
 0xd47   :  { %1426 = vrot.lane.b32.xlu1 %v1386_v22, %s1739_s20  ;;  %1539 = vst [vmem:[#allocation4 + $0x70] sm:$0xff] %v1386_v22 }
 0xd48   :  { %v1415_v23 = vpop.permute.xlu1 %1414 }
 0xd49   :  { %v1425_v24 = vpop.permute.xlu0 %1424 }
 0xd4b   :  { %1442 = vrot.lane.b32.xlu1 %v1374_v21, %s1739_s20 }
 0xd4c   :  { %v1431_v25 = vpop.permute.xlu1 %1430 }
 0xd4d   :  { %v1445_v26 = vsel %vm848_vm6, %v1415_v23, %v1431_v25  ;;  %v1453_v27 = vsel %vm848_vm6, %v1431_v25, %v1415_v23  ;;  %v1441_v28 = vpop.permute.xlu0 %1440 }
 0xd4e   :  { %v1463_v29 = vsel %vm996_vm9, %v1453_v27, 0.0  ;;  %1544 = vst [vmem:[#allocation4 + $0x98] sm:$0xff] %v1445_v26  ;;  %v1450_v30 = vsel %vm848_vm6, %v1425_v24, %v1441_v28  ;;  %v1458_v31 = vsel %vm848_vm6, %v1441_v28, %v1425_v24 }
 0xd4f   :  { %1543 = vst [vmem:[#allocation4 + $0x90] sm:$0xff] %v1463_v29  ;;  %v1473_v32 = vsel %vm996_vm9, %v1458_v31, 0.0  ;;  %1554 = vst [vmem:[#allocation4 + $0xe8] sm:$0xff] %v1450_v30 }
 0xd50   :  { %1553 = vst [vmem:[#allocation4 + $0xe0] sm:$0xff] %v1473_v32  ;;  %v1435_v33 = vpop.permute.xlu1 %1434 }
 0xd54   :  { %v1439_v34 = vpop.permute.xlu1 %1438 }
 0xd58   :  { %v1419_v35 = vpop.permute.xlu1 %1418 }
 0xd59   :  { %v1447_v36 = vsel %vm848_vm6, %v1419_v35, %v1435_v33  ;;  %v1455_v37 = vsel %vm848_vm6, %v1435_v33, %v1419_v35 }
 0xd5a   :  { %v1467_v38 = vsel %vm996_vm9, %v1455_v37, 0.0  ;;  %1548 = vst [vmem:[#allocation4 + $0xb8] sm:$0xff] %v1447_v36 }
 0xd5b   :  { %1547 = vst [vmem:[#allocation4 + $0xb0] sm:$0xff] %v1467_v38 }
 0xd5c   :  { %v1423_v39 = vpop.permute.xlu1 %1422 }
 0xd5d   :  { %v1449_v40 = vsel %vm848_vm6, %v1423_v39, %v1439_v34  ;;  %v1457_v41 = vsel %vm848_vm6, %v1439_v34, %v1423_v39 }
 0xd5e   :  { %v1471_v42 = vsel %vm996_vm9, %v1457_v41, 0.0  ;;  %1552 = vst [vmem:[#allocation4 + $0xd8] sm:$0xff] %v1449_v40 }
 0xd5f   :  { %1551 = vst [vmem:[#allocation4 + $0xd0] sm:$0xff] %v1471_v42 }
 0xdb9   :  { %v1427_v43 = vpop.permute.xlu1 %1426 }
 0xdbd   :  { %v1443_v44 = vpop.permute.xlu1 %1442 }
 0xdbe   :  { %v1451_v45 = vsel %vm848_vm6, %v1427_v43, %v1443_v44  ;;  %v1459_v46 = vsel %vm848_vm6, %v1443_v44, %v1427_v43 }
 0xdbf   :  { %v1475_v47 = vsel %vm996_vm9, %v1459_v46, 0.0  ;;  %1556 = vst [vmem:[#allocation4 + $0xf8] sm:$0xff] %v1451_v45 }
 0xdc0   :  { %1555 = vst [vmem:[#allocation4 + $0xf0] sm:$0xff] %v1475_v47 }
 0xdc1   :  { %1719 = shalt.err (!%p1716_p4)
}
 0xdc2   :  { %s1741_s25 = smov 256  }
 0xdc3   :  { %1568 = dma.vmem_to_hbm [thread:$0]  %s1563_s23, 4096, %s2048_s3, [#allocation5], %s1741_s25, %s1741_s25, %s1737_s18  }
 0xdc4   :  { %1728 = dma.done.wait [#allocation5], 4096  }
 0xdc5   :  { %1729 = vsyncadd [#allocation5], 4294963200 }
 0xdc6   :  { %1572 = vsyncpa [#allocation5], 1 }

</bundles_post_ra>
